<compile_context>
chip_gen: v6e
topology: v6e:2x2x1
jax: 0.10.0
libtpu: 0.0.40
codegen_flags: <defaults>
</compile_context>

<pallas_src>
import functools
import math

import jax
import jax.numpy as jnp
from jax.experimental import pallas as pl
from jax.experimental.pallas import tpu as pltpu


def mha_kernel(xin_ref, gm_ref, prow_ref, pcol_ref, w3_ref, wo_ref, bo_ref,
               o_ref, *, heads: int, batch_tile: int, seq_len: int,
               head_dim: int, mxu_dtype):
    BT, L, hd = batch_tile, seq_len, head_dim
    E = heads * hd
    BH = BT * heads

    # --- fused Q/K/V projection: ONE (BH*L, 3hd) @ (3hd, 3hd) MXU matmul -----
    # Same per-head weight as the PyTorch module; 1/sqrt(E) folded into Wq.
    x2 = xin_ref[...].reshape(BH * L, 3 * hd)
    proj = jnp.dot(x2, w3_ref[...],
                   preferred_element_type=jnp.float32)            # (BH*L, 3hd) f32
    p3 = proj.reshape(BH, L, 3 * hd)
    qh = p3[:, :, 0 * hd:1 * hd].astype(mxu_dtype)                # (BH, L, hd)
    kh = p3[:, :, 1 * hd:2 * hd].astype(mxu_dtype)
    vh = p3[:, :, 2 * hd:3 * hd].astype(mxu_dtype)

    # --- per-(batch, head) energies: one batched einsum, no head loop --------
    e = jnp.einsum('bqd,bkd->bqk', qh, kh,
                   preferred_element_type=jnp.float32)            # (BH, L, L)
    e4 = e.reshape(BT, heads, L, L)

    # --- masks (head-invariant; pad outer-product rebuilt from vectors) ------
    gm = gm_ref[...]                                              # (BT, L, L) f32
    invalid = (prow_ref[...] * pcol_ref[...]) == jnp.float32(0.0)  # (BT, L, L)
    # Reference does masked_fill(-1e20) THEN divides by sqrt(E); the scale is
    # folded into the logits, so fill with the pre-scaled constant.
    neg_fill = jnp.float32(-1e20 / math.sqrt(float(E)))
    e4 = e4 * gm[:, None, :, :]
    e4 = jnp.where(invalid[:, None, :, :], neg_fill, e4)

    # --- softmax over keys (f32 elementwise math, EUP reciprocal) ------------
    m = jnp.max(e4, axis=-1, keepdims=True)
    p = jnp.exp(e4 - m)
    denom = jnp.sum(p, axis=-1, keepdims=True)
    attn = p * pl.reciprocal(denom, approx=True)                  # (BT, heads, L, L)

    # --- context + fc_out as per-head weight rows (no concat scratch) --------
    ctx = jnp.einsum('bqk,bkd->bqd',
                     attn.reshape(BH, L, L).astype(mxu_dtype), vh,
                     preferred_element_type=jnp.float32)          # (BH, L, hd)
    wo3 = wo_ref[...].reshape(heads, hd, E)                       # per-head Wo^T rows
    wo_b = jnp.broadcast_to(wo3[None], (BT, heads, hd, E)).reshape(BH, hd, E)
    y = jnp.einsum('bld,bde->ble', ctx.astype(mxu_dtype), wo_b,
                   preferred_element_type=jnp.float32)            # (BH, L, E)
    out = jnp.sum(y.reshape(BT, heads, L, E), axis=1)             # (BT, L, E)
    o_ref[...] = (out + bo_ref[...]).astype(o_ref.dtype)


def _choose_batch_tile(n, per_row_bytes, target_bytes=2 * 1024 * 1024):
    """Largest divisor of n that keeps the per-step working set small and
    leaves at least 2 grid steps (pipelining + v7x megacore sharding)."""
    cap = max(1, target_bytes // max(per_row_bytes, 1))
    if n >= 2:
        cap = min(cap, n // 2)
    bt = 1
    for d in range(1, n + 1):
        if n % d == 0 and d <= cap:
            bt = d
    return bt


def multi_head_attention(values, keys, query, pad_mask, graph_mask, params,
                         heads, batch_tile=None, mxu_dtype=jnp.float32):
    """values/keys/query: (N, L, E) f32; pad_mask: (N, L) bool;
    graph_mask: (N, L, L); params: wq/wk/wv (hd,hd), wo (E,E), bo (E,)."""
    N, L, E = query.shape
    assert E % heads == 0
    hd = E // heads

    scale = 1.0 / math.sqrt(float(E))
    wq, wk, wv, wo, bo = (params["wq"], params["wk"], params["wv"],
                          params["wo"], params["bo"])

    # Head-major rearrangement + q/k/v concat -> one (N*heads, L, 3*hd) slab.
    def head_major(x):
        return x.reshape(N, L, heads, hd).transpose(0, 2, 1, 3).reshape(
            N * heads, L, hd)

    xin = jnp.concatenate(
        [head_major(query), head_major(keys), head_major(values)],
        axis=-1).astype(mxu_dtype)

    # Fused projection weight: block-diag of (scaled) WqT, WkT, WvT.
    w3 = jnp.zeros((3 * hd, 3 * hd), jnp.float32)
    w3 = w3.at[0:hd, 0:hd].set(scale * wq.T)
    w3 = w3.at[hd:2 * hd, hd:2 * hd].set(wk.T)
    w3 = w3.at[2 * hd:3 * hd, 2 * hd:3 * hd].set(wv.T)
    w3 = w3.astype(mxu_dtype)

    wo_t = wo.T.astype(mxu_dtype)                # (E, E) pre-transposed fc_out
    bo2 = bo.reshape(1, E).astype(jnp.float32)

    gmask = graph_mask.astype(jnp.float32)       # (N, L, L)
    padf = pad_mask.astype(jnp.float32)
    prow = padf.reshape(N, 1, L)                 # pad over keys
    pcol = padf.reshape(N, L, 1)                 # pad over queries

    itemsize = jnp.dtype(mxu_dtype).itemsize
    per_row_bytes = (heads * L * 3 * hd * itemsize   # xin
                     + L * L * 4 + 2 * L * 4         # gmask + pad vectors
                     + L * E * 4)                    # output
    if batch_tile is None:
        batch_tile = _choose_batch_tile(N, per_row_bytes)
    assert N % batch_tile == 0
    BT = batch_tile
    num_tiles = N // BT
    BH = BT * heads

    # VMEM budget: double-buffered I/O + weights + live intermediates,
    # clamped below the smallest generation's (v7x) 64 MiB physical VMEM.
    weight_bytes = ((3 * hd) ** 2) * itemsize + E * E * itemsize + E * 4
    interm_bytes = 4 * BT * heads * L * (3 * hd + 3 * L + hd + E)
    vmem_needed = 2 * BT * per_row_bytes + 2 * weight_bytes + interm_bytes
    vmem_limit = int(min(64 * 1024 * 1024,
                         max(16 * 1024 * 1024, 2 * vmem_needed)))

    flops = int(N * heads * (2 * L * (3 * hd) * (3 * hd)   # fused projection
                             + 2 * L * L * hd              # Q @ K^T
                             + 2 * L * L * hd              # attn @ V
                             + 2 * L * hd * E))            # per-head fc_out rows
    transcendentals = int(N * heads * (L * L + L))
    bytes_accessed = int(N * per_row_bytes + weight_bytes)

    kernel = functools.partial(mha_kernel, heads=heads, batch_tile=BT,
                               seq_len=L, head_dim=hd, mxu_dtype=mxu_dtype)

    out = pl.pallas_call(
        kernel,
        out_shape=jax.ShapeDtypeStruct((N, L, E), jnp.float32),
        grid_spec=pltpu.PrefetchScalarGridSpec(
            num_scalar_prefetch=0,
            grid=(num_tiles,),
            in_specs=[
                pl.BlockSpec((BH, L, 3 * hd), lambda i: (i, 0, 0)),  # q|k|v slab
                pl.BlockSpec((BT, L, L), lambda i: (i, 0, 0)),       # graph mask
                pl.BlockSpec((BT, 1, L), lambda i: (i, 0, 0)),       # pad (keys)
                pl.BlockSpec((BT, L, 1), lambda i: (i, 0, 0)),       # pad (queries)
                pl.BlockSpec((3 * hd, 3 * hd), lambda i: (0, 0)),    # fused Wqkv
                pl.BlockSpec((E, E), lambda i: (0, 0)),              # Wo^T
                pl.BlockSpec((1, E), lambda i: (0, 0)),              # bo
            ],
            out_specs=pl.BlockSpec((BT, L, E), lambda i: (i, 0, 0)),
        ),
        compiler_params=pltpu.CompilerParams(
            dimension_semantics=("parallel",),
            vmem_limit_bytes=vmem_limit),
        cost_estimate=pl.CostEstimate(
            flops=flops, transcendentals=transcendentals,
            bytes_accessed=bytes_accessed),
    )(xin, gmask, prow, pcol, w3, wo_t, bo2)

    return out


def reference_mha(values, keys, query, pad_mask, graph_mask, params, heads):
    """Pure-JAX replica of the PyTorch forward, for verification."""
    N, L, E = query.shape
    hd = E // heads
    wq, wk, wv, wo, bo = (params["wq"], params["wk"], params["wv"],
                          params["wo"], params["bo"])
    v = values.reshape(N, L, heads, hd) @ wv.T
    k = keys.reshape(N, L, heads, hd) @ wk.T
    q = query.reshape(N, L, heads, hd) @ wq.T
    energy = jnp.einsum("nqhd,nkhd->nhqk", q, k)
    energy = energy * graph_mask.reshape(N, 1, L, L)
    pf = pad_mask.astype(jnp.float32)
    fm = (pf[:, :, None] @ pf[:, None, :])[:, None, :, :]
    energy = jnp.where(fm == 0.0, jnp.float32(-1e20), energy)
    attn = jax.nn.softmax(energy / math.sqrt(float(E)), axis=3)
    out = jnp.einsum("nhql,nlhd->nqhd", attn, v).reshape(N, L, E)
    return out @ wo.T + bo


if __name__ == "__main__":
    N, L, heads, head_dim = 2, 8, 4, 8
    E = heads * head_dim  # 32

    key = jax.random.PRNGKey(0)
    kq, kk, kv, kwq, kwk, kwv, kwo, kbo, kgm = jax.random.split(key, 9)

    query = jax.random.normal(kq, (N, L, E), dtype=jnp.float32)
    keys_ = jax.random.normal(kk, (N, L, E), dtype=jnp.float32)
    values_ = jax.random.normal(kv, (N, L, E), dtype=jnp.float32)

    # pad_mask: batch 0 has last 2 positions padded, batch 1 fully valid
    pad_mask = jnp.array([[True] * 6 + [False] * 2, [True] * 8], dtype=jnp.bool_)
    # graph_mask: random binary adjacency-style mask
    graph_mask = (jax.random.uniform(kgm, (N, L, L)) > 0.3).astype(jnp.float32)

    bnd_h = 1.0 / math.sqrt(head_dim)
    bnd_e = 1.0 / math.sqrt(E)
    params = {
        "wq": jax.random.uniform(kwq, (head_dim, head_dim), jnp.float32, -bnd_h, bnd_h),
        "wk": jax.random.uniform(kwk, (head_dim, head_dim), jnp.float32, -bnd_h, bnd_h),
        "wv": jax.random.uniform(kwv, (head_dim, head_dim), jnp.float32, -bnd_h, bnd_h),
        "wo": jax.random.uniform(kwo, (E, E), jnp.float32, -bnd_e, bnd_e),
        "bo": jax.random.uniform(kbo, (E,), jnp.float32, -bnd_e, bnd_e),
    }

    ref = reference_mha(values_, keys_, query, pad_mask, graph_mask, params, heads)

    # f32 MXU-operand path (strict parity with the PyTorch reference)
    out = multi_head_attention(values_, keys_, query, pad_mask, graph_mask,
                               params, heads)
    out = jax.block_until_ready(out)
    assert out.shape == (N, L, E)
    assert jnp.allclose(out, ref, atol=2e-3, rtol=2e-3), "f32 mismatch vs reference"

    # bf16 MXU-operand path (v6e/v7x perf mode; f32 accumulation + f32 softmax)
    out_bf16 = multi_head_attention(values_, keys_, query, pad_mask, graph_mask,
                                    params, heads, mxu_dtype=jnp.bfloat16)
    out_bf16 = jax.block_until_ready(out_bf16)
    assert jnp.allclose(out_bf16, ref, atol=5e-2, rtol=5e-2), "bf16 mismatch vs reference"

    print("KERNEL_OK")
</pallas_src>

<mosaic_0001>
module attributes {stable_mosaic.version = 11 : i64} {
  func.func @mha_kernel(%arg0: i32, %arg1: memref<4x8x24xf32, #tpu.memory_space<vmem>>, %arg2: memref<1x8x8xf32, #tpu.memory_space<vmem>>, %arg3: memref<1x1x8xf32, #tpu.memory_space<vmem>>, %arg4: memref<1x8x1xf32, #tpu.memory_space<vmem>>, %arg5: memref<24x24xf32, #tpu.memory_space<vmem>>, %arg6: memref<32x32xf32, #tpu.memory_space<vmem>>, %arg7: memref<1x32xf32, #tpu.memory_space<vmem>>, %arg8: memref<1x8x32xf32, #tpu.memory_space<vmem>>) attributes {dimension_semantics = [#tpu.dimension_semantics<parallel>], iteration_bounds = array<i64: 2>, scalar_prefetch = 0 : i64, scratch_operands = 0 : i64, tpu.core_type = #tpu.core_type<tc>, window_params = [{transform_indices = @transform_0, window_bounds = array<i64: 4, 8, 24>}, {transform_indices = @transform_1, window_bounds = array<i64: 1, 8, 8>}, {transform_indices = @transform_2, window_bounds = array<i64: 1, 1, 8>}, {transform_indices = @transform_3, window_bounds = array<i64: 1, 8, 1>}, {pipeline_mode = #tpu.pipeline_mode<synchronous>, transform_indices = @transform_4, window_bounds = array<i64: 24, 24>}, {pipeline_mode = #tpu.pipeline_mode<synchronous>, transform_indices = @transform_5, window_bounds = array<i64: 32, 32>}, {pipeline_mode = #tpu.pipeline_mode<synchronous>, transform_indices = @transform_6, window_bounds = array<i64: 1, 32>}, {transform_indices = @transform_7, window_bounds = array<i64: 1, 8, 32>}]} {
    %c0 = arith.constant 0 : index
    %c0_0 = arith.constant 0 : index
    %c0_1 = arith.constant 0 : index
    %0 = vector.load %arg1[%c0, %c0_0, %c0_1] : memref<4x8x24xf32, #tpu.memory_space<vmem>>, vector<4x8x24xf32>
    %1 = vector.shape_cast %0 : vector<4x8x24xf32> to vector<32x24xf32>
    %c0_2 = arith.constant 0 : index
    %c0_3 = arith.constant 0 : index
    %2 = vector.load %arg5[%c0_2, %c0_3] : memref<24x24xf32, #tpu.memory_space<vmem>>, vector<24x24xf32>
    %cst = arith.constant dense<0.000000e+00> : vector<32x24xf32>
    %3 = tpu.matmul %1, %2, %cst {dimension_numbers = #tpu.dot_dimension_numbers<[1], [0], [0], [1], [0, 0, 1, 1], [], []>} : vector<32x24xf32>, vector<24x24xf32>, vector<32x24xf32> -> vector<32x24xf32>
    %4 = vector.shape_cast %3 : vector<32x24xf32> to vector<4x8x24xf32>
    %5 = vector.extract_strided_slice %4 {offsets = [0, 0, 0], sizes = [4, 8, 8], strides = [1, 1, 1]} : vector<4x8x24xf32> to vector<4x8x8xf32>
    %6 = vector.extract_strided_slice %4 {offsets = [0, 0, 8], sizes = [4, 8, 8], strides = [1, 1, 1]} : vector<4x8x24xf32> to vector<4x8x8xf32>
    %7 = vector.extract_strided_slice %4 {offsets = [0, 0, 16], sizes = [4, 8, 8], strides = [1, 1, 1]} : vector<4x8x24xf32> to vector<4x8x8xf32>
    "tpu.trace_start"() <{level = 10 : i32, message = "bqd,bkd->bqk"}> : () -> ()
    %cst_4 = arith.constant dense<0.000000e+00> : vector<4x8x8xf32>
    %8 = tpu.matmul %5, %6, %cst_4 {dimension_numbers = #tpu.dot_dimension_numbers<[2], [2], [1], [1], [0, 0, 0, 1, 1, 1], [0], [0]>} : vector<4x8x8xf32>, vector<4x8x8xf32>, vector<4x8x8xf32> -> vector<4x8x8xf32>
    "tpu.trace_stop"() : () -> ()
    %9 = vector.shape_cast %8 : vector<4x8x8xf32> to vector<1x4x8x8xf32>
    %c0_5 = arith.constant 0 : index
    %c0_6 = arith.constant 0 : index
    %c0_7 = arith.constant 0 : index
    %10 = vector.load %arg2[%c0_5, %c0_6, %c0_7] : memref<1x8x8xf32, #tpu.memory_space<vmem>>, vector<1x8x8xf32>
    %c0_8 = arith.constant 0 : index
    %c0_9 = arith.constant 0 : index
    %c0_10 = arith.constant 0 : index
    %11 = vector.load %arg3[%c0_8, %c0_9, %c0_10] : memref<1x1x8xf32, #tpu.memory_space<vmem>>, vector<1x1x8xf32>
    %c0_11 = arith.constant 0 : index
    %c0_12 = arith.constant 0 : index
    %c0_13 = arith.constant 0 : index
    %12 = vector.load %arg4[%c0_11, %c0_12, %c0_13] : memref<1x8x1xf32, #tpu.memory_space<vmem>>, vector<1x8x1xf32>
    %13 = vector.broadcast %11 : vector<1x1x8xf32> to vector<1x8x8xf32>
    %14 = vector.broadcast %12 : vector<1x8x1xf32> to vector<1x8x8xf32>
    %15 = arith.mulf %13, %14 : vector<1x8x8xf32>
    %cst_14 = arith.constant 0.000000e+00 : f32
    %16 = vector.broadcast %cst_14 : f32 to vector<1x8x8xf32>
    %17 = arith.cmpf oeq, %15, %16 : vector<1x8x8xf32>
    %18 = vector.shape_cast %10 : vector<1x8x8xf32> to vector<1x1x8x8xf32>
    %19 = vector.broadcast %18 : vector<1x1x8x8xf32> to vector<1x4x8x8xf32>
    %20 = arith.mulf %9, %19 : vector<1x4x8x8xf32>
    %21 = vector.shape_cast %17 : vector<1x8x8xi1> to vector<1x1x8x8xi1>
    %cst_15 = arith.constant -1.76776698E+19 : f32
    %22 = vector.shape_cast %21 : vector<1x1x8x8xi1> to vector<1x1x8x8xi1>
    %23 = vector.broadcast %22 : vector<1x1x8x8xi1> to vector<1x4x8x8xi1>
    %24 = vector.broadcast %cst_15 : f32 to vector<1x4x8x8xf32>
    %25 = arith.select %23, %24, %20 : vector<1x4x8x8xi1>, vector<1x4x8x8xf32>
    %cst_16 = arith.constant dense<0xFF800000> : vector<1x4x8xf32>
    %26 = vector.multi_reduction <maximumf>, %25, %cst_16 [3] : vector<1x4x8x8xf32> to vector<1x4x8xf32>
    %27 = vector.shape_cast %26 : vector<1x4x8xf32> to vector<1x4x8x1xf32>
    %28 = vector.broadcast %27 : vector<1x4x8x1xf32> to vector<1x4x8x8xf32>
    %29 = arith.subf %25, %28 : vector<1x4x8x8xf32>
    %30 = math.exp %29 : vector<1x4x8x8xf32>
    %cst_17 = arith.constant dense<0.000000e+00> : vector<1x4x8xf32>
    %31 = vector.multi_reduction <add>, %30, %cst_17 [3] : vector<1x4x8x8xf32> to vector<1x4x8xf32>
    %32 = vector.shape_cast %31 : vector<1x4x8xf32> to vector<1x4x8x1xf32>
    %33 = tpu.reciprocal %32 {approx = true} : vector<1x4x8x1xf32> -> vector<1x4x8x1xf32>
    %34 = vector.broadcast %33 : vector<1x4x8x1xf32> to vector<1x4x8x8xf32>
    %35 = arith.mulf %30, %34 : vector<1x4x8x8xf32>
    %36 = vector.shape_cast %35 : vector<1x4x8x8xf32> to vector<4x8x8xf32>
    "tpu.trace_start"() <{level = 10 : i32, message = "bqk,bkd->bqd"}> : () -> ()
    %cst_18 = arith.constant dense<0.000000e+00> : vector<4x8x8xf32>
    %37 = tpu.matmul %36, %7, %cst_18 {dimension_numbers = #tpu.dot_dimension_numbers<[2], [1], [1], [2], [0, 0, 0, 1, 1, 2], [0], [0]>} : vector<4x8x8xf32>, vector<4x8x8xf32>, vector<4x8x8xf32> -> vector<4x8x8xf32>
    "tpu.trace_stop"() : () -> ()
    %c0_19 = arith.constant 0 : index
    %c0_20 = arith.constant 0 : index
    %38 = vector.load %arg6[%c0_19, %c0_20] : memref<32x32xf32, #tpu.memory_space<vmem>>, vector<32x32xf32>
    %39 = vector.shape_cast %38 : vector<32x32xf32> to vector<4x8x32xf32>
    %40 = vector.shape_cast %39 : vector<4x8x32xf32> to vector<1x4x8x32xf32>
    %41 = vector.shape_cast %40 : vector<1x4x8x32xf32> to vector<4x8x32xf32>
    "tpu.trace_start"() <{level = 10 : i32, message = "bld,bde->ble"}> : () -> ()
    %cst_21 = arith.constant dense<0.000000e+00> : vector<4x8x32xf32>
    %42 = tpu.matmul %37, %41, %cst_21 {dimension_numbers = #tpu.dot_dimension_numbers<[2], [1], [1], [2], [0, 0, 0, 1, 1, 2], [0], [0]>} : vector<4x8x8xf32>, vector<4x8x32xf32>, vector<4x8x32xf32> -> vector<4x8x32xf32>
    "tpu.trace_stop"() : () -> ()
    %43 = vector.shape_cast %42 : vector<4x8x32xf32> to vector<1x4x8x32xf32>
    %cst_22 = arith.constant dense<0.000000e+00> : vector<1x8x32xf32>
    %44 = vector.multi_reduction <add>, %43, %cst_22 [1] : vector<1x4x8x32xf32> to vector<1x8x32xf32>
    %c0_23 = arith.constant 0 : index
    %c0_24 = arith.constant 0 : index
    %45 = vector.load %arg7[%c0_23, %c0_24] : memref<1x32xf32, #tpu.memory_space<vmem>>, vector<1x32xf32>
    %46 = vector.shape_cast %45 : vector<1x32xf32> to vector<1x1x32xf32>
    %47 = vector.broadcast %46 : vector<1x1x32xf32> to vector<1x8x32xf32>
    %48 = arith.addf %44, %47 : vector<1x8x32xf32>
    %c0_25 = arith.constant 0 : index
    %c0_26 = arith.constant 0 : index
    %c0_27 = arith.constant 0 : index
    %49 = vector.load %arg8[%c0_25, %c0_26, %c0_27] : memref<1x8x32xf32, #tpu.memory_space<vmem>>, vector<1x8x32xf32>
    tpu.vector_store %arg8[%c0_25, %c0_26, %c0_27], %48 {strides = array<i32>} : memref<1x8x32xf32, #tpu.memory_space<vmem>>, vector<1x8x32xf32>,
    return
  }
  func.func @transform_0(%arg0: i32) -> (i32, i32, i32) {
    %c0_i32 = arith.constant 0 : i32
    %c0_i32_0 = arith.constant 0 : i32
    %c0_i32_1 = arith.constant 0 : i32
    return %arg0, %c0_i32, %c0_i32_0 : i32, i32, i32
  }
  func.func @transform_1(%arg0: i32) -> (i32, i32, i32) {
    %c0_i32 = arith.constant 0 : i32
    %c0_i32_0 = arith.constant 0 : i32
    %c0_i32_1 = arith.constant 0 : i32
    return %arg0, %c0_i32, %c0_i32_0 : i32, i32, i32
  }
  func.func @transform_2(%arg0: i32) -> (i32, i32, i32) {
    %c0_i32 = arith.constant 0 : i32
    %c0_i32_0 = arith.constant 0 : i32
    %c0_i32_1 = arith.constant 0 : i32
    return %arg0, %c0_i32, %c0_i32_0 : i32, i32, i32
  }
  func.func @transform_3(%arg0: i32) -> (i32, i32, i32) {
    %c0_i32 = arith.constant 0 : i32
    %c0_i32_0 = arith.constant 0 : i32
    %c0_i32_1 = arith.constant 0 : i32
    return %arg0, %c0_i32, %c0_i32_0 : i32, i32, i32
  }
  func.func @transform_4(%arg0: i32) -> (i32, i32) {
    %c0_i32 = arith.constant 0 : i32
    %c0_i32_0 = arith.constant 0 : i32
    %c0_i32_1 = arith.constant 0 : i32
    return %c0_i32, %c0_i32_0 : i32, i32
  }
  func.func @transform_5(%arg0: i32) -> (i32, i32) {
    %c0_i32 = arith.constant 0 : i32
    %c0_i32_0 = arith.constant 0 : i32
    %c0_i32_1 = arith.constant 0 : i32
    return %c0_i32, %c0_i32_0 : i32, i32
  }
  func.func @transform_6(%arg0: i32) -> (i32, i32) {
    %c0_i32 = arith.constant 0 : i32
    %c0_i32_0 = arith.constant 0 : i32
    %c0_i32_1 = arith.constant 0 : i32
    return %c0_i32, %c0_i32_0 : i32, i32
  }
  func.func @transform_7(%arg0: i32) -> (i32, i32, i32) {
    %c0_i32 = arith.constant 0 : i32
    %c0_i32_0 = arith.constant 0 : i32
    %c0_i32_1 = arith.constant 0 : i32
    return %arg0, %c0_i32, %c0_i32_0 : i32, i32, i32
  }
}

</mosaic_0001>

<bundles_post_ra>
// kernel: tpu_custom_call.1
= control target key start
LH: loop header
LB: loop body
LE: loop exit
PB: predicated region body
PF: predicated region fallthrough
CT: control target
= control target key end

     0   :  { %s2475_s0 = inlined_call_operand.hbm [shape: f32[8,8,24], index: 0, kind: input, shape index: {}]   ;;  %s2476_s1 = inlined_call_operand.hbm [shape: f32[2,8,8], index: 1, kind: input, shape index: {}]   ;;  %s2477_s2 = inlined_call_operand.hbm [shape: f32[2,1,8], index: 2, kind: input, shape index: {}]   ;;  %s2478_s3 = inlined_call_operand.vmem [shape: f32[2,8,1], index: 3, kind: input, shape index: {}]   ;;  %s2479_s4 = inlined_call_operand.vmem [shape: f32[24,24], index: 4, kind: input, shape index: {}]   ;;  %s2480_s5 = inlined_call_operand.hbm [shape: f32[32,32], index: 5, kind: input, shape index: {}]   ;;  %s2481_s6 = inlined_call_operand.vmem [shape: f32[1,32], index: 6, kind: input, shape index: {}]   ;;  %s2482_s7 = inlined_call_operand.hbm [shape: f32[2,8,32], index: 7, kind: output, shape index: {}]  }
   0x1   :  { %2494 = sst [smem:[#allocation20_spill]] %s2475_s0 }
   0x2   :  { %2495 = sst [smem:[#allocation21_spill]] %s2476_s1 }
   0x3   :  { %2496 = sst [smem:[#allocation22_spill]] %s2480_s5 }
   0x4   :  { %2497 = sst [smem:[#allocation23_spill]] %s2482_s7 }
   0x5   :  { %12 = vsyncpa [#allocation3], 0 }
   0x6   :  { %14 = vsyncpa [#allocation3 + $0x1], 0 }
   0x7   :  { %15 = vsyncpa [#allocation6], 0 }
   0x8   :  { %17 = vsyncpa [#allocation6 + $0x1], 0 }
   0x9   :  { %18 = vsyncpa [#allocation9], 0 }
   0xa   :  { %19 = vsyncpa [#allocation4], 0 }
   0xb   :  { %21 = vsyncpa [#allocation4 + $0x1], 0  ;;  %s2118_s24 = smov 0   ;;  %s2120_s25 = smov 0  }
   0xc   :  { %s2122_s26 = smov 0   ;;  %s2124_s27 = smov 0  }
   0xd LB: > { %2498 = sst [smem:[#allocation15_spill]] %s2052_s24  ;;  %s2139_s28 = sadd.s32 1, %s2064_s27   ;;  %s2064_s27 = sphi %s2124_s27, %s2524_s27   ;;  %s2060_s26 = sphi %s2122_s26, %s2526_s26   ;;  %s2056_s25 = sphi %s2120_s25, %s2528_s25   ;;  %s2052_s24 = sphi %s2118_s24, %s2527_s24  }
   0xe   : > { %2499 = sst [smem:[#allocation16_spill]] %s2060_s26  ;;  %s34_s29 = sadd.s32 1, %s2060_s26 }
   0xf   : > { %2500 = sst [smem:[#allocation17_spill]] %s2139_s28  ;;  %s31_s30 = ssub.s32 %s2064_s27, %s2139_s28 }
  0x10   : > { %p2483_p0 = scmp.ne.s32.totalorder %s2060_s26, %s2056_s25  ;;  %p32_p1 = scmp.eq.s32.totalorder %s31_s30, 0 }
  0x11   : > { %p42_p2 = scmp.eq.s32.totalorder %s2064_s27, 0  ;;  %p1822_p4 = scmp.lt.s32.totalorder %s2064_s27, 2 }
  0x12   : > { %s2150_s8 = scalar_select %p32_p1, %s2060_s26, %s34_s29  }
  0x13   : > { %p43_p5 = por %p42_p2, %p2483_p0  ;;  %s2156_s9 = sand.u32 1, %s2060_s26  }
  0x14   : > { %2501 = sst [smem:[#allocation18_spill]] %s2150_s8  ;;  %s278_s10 = sand.u32 1, %s2064_s27  }
  0x15   : > { %s1652_s11 = sshll.u32 %s2156_s9, 3  ;;  %p2160_p6 = pnand %p1822_p4, %p43_p5 }
  0x16   : > { %s1653_s13 = sshll.u32 %s2064_s27, 7  ;;  %s2503_s1 = sld [smem:[#allocation21_spill]] }
  0x17   : > { %s282_s17 = scalar_lea.vmem [#allocation5], %s1652_s11  ;;  %s2170_s19 = scalar_lea.sflag [#allocation6], %s278_s10 }
  0x18   : > { %s289_s18 = sshll.u32 %s282_s17, 4  ;;  %p2176_p8 = pneg %p2160_p6  ;;  %s290_s18 = int_to_ptr.vmem [resolvable:$true] %s289_s18 }
  0x1c   : > { %s2168_s16 = scalar_lea.hbm %s2503_s1, %s1653_s13  ;;  %s1887_s29 = scalar_lea.hbm %s2503_s1, 256 }
  0x1d   : > { %s1882_s20 = scalar_lea.hbm %s2168_s16, 128  ;;  %p1888_p11 = scmp.lt.s32.totalorder %s2168_s16, %s2503_s1 }
  0x1e   : > { %p1883_p7 = scmp.ne.s32.totalorder %s2168_s16, %s1882_s20  ;;  %p1889_p12 = scmp.lt.s32.totalorder %s1887_s29, %s1882_s20 }
  0x20   : > { %p1885_p9 = pnand %p2176_p8, %p1883_p7  ;;  %p1890_p13 = por %p1889_p12, %p1888_p11 }
  0x22   : > { %p1886_p10 = pneg %p1885_p9 }
  0x24   : > { %p1891_p1 = pnand %p1890_p13, %p1886_p10 }
  0x26   : > { %1894 = shalt.err (!%p1891_p1)
}
  0x27   : > { %s1895_s10 = scalar_lea.vmem %s290_s18, 128  ;;  %s2066_s13 = smov [#allocation5]  }
  0x28   : > { %p1896_p2 = scmp.ne.s32.totalorder %s290_s18, %s1895_s10  ;;  %s1900_s14 = sshll.u32 %s2066_s13, 4  ;;  %s1901_s14 = int_to_ptr.vmem [resolvable:$false] %s1900_s14 }
  0x29   : > { %s1902_s15 = scalar_lea.vmem %s1901_s14, 256  ;;  %p1903_p7 = scmp.lt.s32.totalorder %s290_s18, %s1901_s14 }
  0x2a   : > { %p1898_p4 = pnand %p1896_p2, %p2176_p8  ;;  %p1904_p9 = scmp.lt.s32.totalorder %s1902_s15, %s1895_s10 }
  0x2c   : > { %p1899_p5 = pneg %p1898_p4  ;;  %p1905_p3 = por %p1904_p9, %p1903_p7 }
  0x2e   : > { %p1906_p0 = pnand %p1905_p3, %p1899_p5 }
  0x30   : > { %1909 = shalt.err (!%p1906_p0)
}
  0x31   : > { %1813 = dma.hbm_to_vmem [thread:$0]  (!%p2160_p6), %s2168_s16, 128, %s290_s18, %s2170_s19  }
  0x32   : > { %s2196_s17 = sadd.s32 4294967295, %s2064_s27   ;;  %s1645_s20 = sadd.s32 4294967294, %s2064_s27  }
  0x33   : > { %p47_p0 = scmp.ne.s32.totalorder %s2056_s25, %s2052_s24  ;;  %p2484_p3 = scmp.eq.s32.totalorder %s2196_s17, 0 }
  0x34   : > { %p212_p10 = scmp.eq.s32.totalorder %s2196_s17, 1  ;;  %p218_p11 = scmp.eq.s32.totalorder %s1645_s20, 1 }
  0x35   : > { %p2205_p12 = por %p2484_p3, %p47_p0  ;;  %p1646_p13 = scmp.ge.s32.totalorder %s2064_s27, 1 }
  0x36   : > { %p2506_p1 = scmp.ne.s32.totalorder %s2060_s26, %s2056_s25  ;;  %p2217_p4 = por %p218_p11, %p47_p0 }
  0x37   : > { %s2505_s22 = scalar_select %p2205_p12, 1, 0 }
  0x38   : > { %p2213_p2 = por %p212_p10, %p2506_p1  ;;  %p225_p5 = scmp.lt.s32.totalorder %s2064_s27, 3 }
  0x39   : > { %s2508_s18 = scalar_select %p2217_p4, 1, 0 }
  0x3a   : > { %s2507_s16 = scalar_select %p2213_p2, 1, 0 }
  0x3b   : > { %2509 = sst [smem:[#allocation19_spill]] %s2508_s18  ;;  %p2222_p7 = pnand %p1646_p13, %p225_p5 }
  0x3c   : > { %s2067_s29 = smov [#allocation8]   ;;  %s1649_s11 = sshll.u32 %s2156_s9, 5 }
  0x3d   : > { %s2510_s23 = scalar_select %p2222_p7, 1, 0 }
  0x3e   : > { %s240_s30 = sshll.u32 %s2067_s29, 4  ;;  %p1803_p9 = pneg %p2222_p7  ;;  %s241_s30 = int_to_ptr.vmem [resolvable:$true] %s240_s30 }
  0x3f   : > { %s1687_s10 = sshll.u32 %s2064_s27, 9  ;;  %s2512_s0 = sld [smem:[#allocation20_spill]] }
  0x40   : > { %p2232_p10 = pnand %p1803_p9, %p2484_p3  ;;  %s261_s1 = scalar_lea.vmem [#allocation2], %s1649_s11 }
  0x41   : > { %s268_s8 = sshll.u32 %s261_s1, 4  ;;  %s1921_s29 = scalar_lea.vmem %s241_s30, 512  ;;  %s2241_s8 = int_to_ptr.vmem [resolvable:$true] %s268_s8 }
  0x42   : > { %p1912_p0 = pneg %p2232_p10  ;;  %p1922_p11 = scmp.ne.s32.totalorder %s241_s30, %s1921_s29 }
  0x43   : > { %p1929_p5 = scmp.lt.s32.totalorder %s241_s30, %s241_s30  ;;  %p1930_p9 = scmp.lt.s32.totalorder %s1921_s29, %s1921_s29 }
  0x44   : > { %p1924_p13 = pnand %p1922_p11, %p1912_p0 }
  0x45   : > { %s2239_s20 = scalar_lea.hbm %s2512_s0, %s1687_s10  ;;  %p1931_p3 = por %p1930_p9, %p1929_p5 }
  0x46   : > { %p1925_p1 = pneg %p1924_p13 }
  0x48   : > { %p1932_p4 = pnand %p1931_p3, %p1925_p1 }
  0x4a   : > { %1935 = shalt.err (!%p1932_p4)
}
  0x4b   : > { %s2068_s26 = smov 128   ;;  %s2069_s1 = smov 8  }
  0x4c   : > { %s2513_s5 = sld [smem:[#allocation22_spill]]  ;;  %s258_s14 = scalar_lea.sflag [#allocation3], %s2156_s9 }
  0x4d   : > { %s1936_s15 = scalar_lea.hbm %s2239_s20, 512  ;;  %s1941_s18 = scalar_lea.hbm %s2512_s0, 1024 }
  0x4e   : > { %p1937_p3 = scmp.ne.s32.totalorder %s2239_s20, %s1936_s15  ;;  %p1942_p11 = scmp.lt.s32.totalorder %s2239_s20, %s2512_s0 }
  0x4f   : > { %p1943_p13 = scmp.lt.s32.totalorder %s1941_s18, %s1936_s15 }
  0x50   : > { %p1939_p4 = pnand %p1937_p3, %p2176_p8 }
  0x51   : > { %p1944_p1 = por %p1943_p13, %p1942_p11 }
  0x52   : > { %1806 = dma.hbm_to_vmem [thread:$0]  (!%p2232_p10), %s2513_s5, 512, %s241_s30, [#allocation9], %s2068_s26, %s2068_s26, %s2069_s1  }
  0x53   : > { %p1940_p0 = pneg %p1939_p4 }
  0x55   : > { %p1945_p5 = pnand %p1944_p1, %p1940_p0 }
  0x57   : > { %1948 = shalt.err (!%p1945_p5)
}
  0x58   : > { %s1949_s30 = scalar_lea.vmem %s2241_s8, 512  ;;  %s2070_s13 = smov [#allocation2]  }
  0x59   : > { %p1950_p10 = scmp.ne.s32.totalorder %s2241_s8, %s1949_s30  ;;  %s1954_s28 = sshll.u32 %s2070_s13, 4  ;;  %s1955_s28 = int_to_ptr.vmem [resolvable:$false] %s1954_s28 }
  0x5a   : > { %s1956_s11 = scalar_lea.vmem %s1955_s28, 1024  ;;  %p1957_p4 = scmp.lt.s32.totalorder %s2241_s8, %s1955_s28 }
  0x5b   : > { %p1952_p9 = pnand %p1950_p10, %p2176_p8  ;;  %p1958_p2 = scmp.lt.s32.totalorder %s1956_s11, %s1949_s30 }
  0x5d   : > { %p1953_p3 = pneg %p1952_p9  ;;  %p1959_p12 = por %p1958_p2, %p1957_p4 }
  0x5f   : > { %p1960_p7 = pnand %p1959_p12, %p1953_p3 }
  0x61   : > { %1963 = shalt.err (!%p1960_p7)
}
  0x62   : > { %1810 = dma.hbm_to_vmem [thread:$0]  (!%p2160_p6), %s2239_s20, 512, %s2241_s8, %s258_s14, %s2068_s26, %s2068_s26, %s2069_s1  }
  0x63   : > { %s1654_s7 = sshll.u32 %s2064_s27, 4  ;;  %s299_s15 = scalar_lea.vmem [#allocation7], %s2156_s9 }
  0x64   : > { %s304_s10 = scalar_lea.hbm %s2477_s2, %s1654_s7  ;;  %s306_s29 = sshll.u32 %s299_s15, 4  ;;  %s307_s29 = int_to_ptr.vmem [resolvable:$true] %s306_s29 }
  0x65   : > { %s1964_s30 = scalar_lea.hbm %s304_s10, 16  ;;  %s1969_s11 = scalar_lea.hbm %s2477_s2, 32 }
  0x66   : > { %p1965_p12 = scmp.ne.s32.totalorder %s304_s10, %s1964_s30  ;;  %p1970_p0 = scmp.lt.s32.totalorder %s304_s10, %s2477_s2 }
  0x67   : > { %p1971_p11 = scmp.lt.s32.totalorder %s1969_s11, %s1964_s30 }
  0x68   : > { %p1967_p2 = pnand %p1965_p12, %p2176_p8 }
  0x69   : > { %p1972_p13 = por %p1971_p11, %p1970_p0 }
  0x6a   : > { %p1968_p7 = pneg %p1967_p2 }
  0x6c   : > { %p1973_p1 = pnand %p1972_p13, %p1968_p7 }
  0x6e   : > { %1976 = shalt.err (!%p1973_p1)
}
  0x6f   : > { %s1977_s26 = scalar_lea.vmem %s307_s29, 16  ;;  %s2071_s8 = smov [#allocation7]  }
  0x70   : > { %p1978_p5 = scmp.ne.s32.totalorder %s307_s29, %s1977_s26  ;;  %s1982_s9 = sshll.u32 %s2071_s8, 4  ;;  %s1983_s9 = int_to_ptr.vmem [resolvable:$false] %s1982_s9 }
  0x71   : > { %s1984_s20 = scalar_lea.vmem %s1983_s9, 32  ;;  %p1985_p3 = scmp.lt.s32.totalorder %s307_s29, %s1983_s9 }
  0x72   : > { %p1980_p10 = pnand %p1978_p5, %p2176_p8  ;;  %p1986_p4 = scmp.lt.s32.totalorder %s1984_s20, %s1977_s26 }
  0x74   : > { %p1981_p9 = pneg %p1980_p10  ;;  %p1987_p12 = por %p1986_p4, %p1985_p3 }
  0x76   : > { %p1988_p2 = pnand %p1987_p12, %p1981_p9 }
  0x78   : > { %1991 = shalt.err (!%p1988_p2)
}
  0x79   : > { %1816 = dma.hbm_to_vmem [thread:$0]  (!%p2160_p6), %s304_s10, 16, %s307_s29, %s2170_s19  }
  0x7a   : > { %p2514_p7 = scmp.ne.s32.totalorder %s2510_s23, 0 }
  0x7b   : > { %s2298_s0 = sand.u32 (!%p2514_p7), 1, %s2056_s25   ;;  %p2515_p8 = scmp.ne.s32.totalorder (!%p2514_p7), %s2505_s22, 0 }
  0x7c   : > { %322 = sbr.rel (%p2514_p7) target bundleno = 1423 (0x58f), region = 48  ;;  %s1656_s5 = sshll.u32 (!%p2514_p7), %s2298_s0, 5 }
  0x7d   : > { %s325_s21 = scalar_lea.sflag (!%p2514_p7), [#allocation3], %s2298_s0  ;;  %s328_s1 = scalar_lea.vmem (!%p2514_p7), [#allocation2], %s1656_s5 }
  0x81   : > { %2035 = dma.done.wait (%p2515_p8), %s325_s21, 512  }
  0x82   : > { %2037 = vsyncadd (%p2515_p8), %s325_s21, 4294966784  ;;  %s333_s12 = sand.u32 1, %s2196_s17   ;;  %s1657_s19 = sshll.u32 %s2298_s0, 3 }
  0x83   : > { %s334_s23 = scalar_lea.sflag [#allocation6], %s333_s12  ;;  %s2310_s14 = scalar_lea.vmem [#allocation5], %s1657_s19 }
  0x84   : > { %2039 = dma.done.wait (%p2515_p8), %s334_s23, 144  }
  0x85   : > { %2041 = vsyncadd (%p2515_p8), %s334_s23, 4294967152  ;;  %s345_s7 = scalar_lea.vmem [#allocation7], %s2298_s0  ;;  %p2516_p6 = scmp.eq.s32.totalorder %s2196_s17, 0 }
  0x87   : > { %2043 = dma.done.wait (%p2516_p6), [#allocation9], 512   ;;  %p2517_p0 = pmov %p2516_p6 }
  0x88   : > { %vm405_vm0 = vcmask 195584   ;;  %v404_v0 = vld [vmem:[%s2479_s4 + $0x10] sm:$0xff]  ;;  %v403_v1 = vld [vmem:[%s2479_s4 + $0x8] sm:$0xff]  ;;  %v398_v2 = vld [vmem:[%s328_s1] sm:$0xff]  ;;  %v2072_v7 = vmov 0.0   ;;  %vm2073_vm1 = vmmov 0  }
  0x89   : > { %2045 = vsyncadd (%p2517_p0), [#allocation9], 4294966784  ;;  %1719 = vmatprep.subr.mxu0 %v404_v0  ;;  %v402_v3 = vld [vmem:[%s2479_s4] sm:$0xff]  ;;  %1725 = vmatprep.mubr.msk.f32.mxu0 %vm405_vm0, %v398_v2  ;;  %v399_v4 = vld [vmem:[%s328_s1 + $0x8] sm:$0xff]  ;;  %p394_p11 = scmp.lt.s32.totalorder %s2196_s17, 1  ;;  %v2074_v10 = vmov 0  }
  0x8a   : > { %1720 = vmatpush3.msra.mxu0 %v404_v0  ;;  %v400_v5 = vld [vmem:[%s328_s1 + $0x10] sm:$0xff]  ;;  %v401_v6 = vld [vmem:[%s328_s1 + $0x18] sm:$0xff]  ;;  %1731 = vmatprep.subr.mxu1 %v2072_v7  ;;  %s2075_s30 = smov 120   ;;  %vm506_vm2 = vcmask 64512   ;;  %v1673_v18 = vld [vmem:[%s345_s7] ss:$0 sm:$0xff] }
  0x8b   : > { %1721 = vmatprep.subr.mxu0 %v403_v1  ;;  %1733 = vmatprep.mubr.msk.f32.mxu1 %vm2073_vm1, %v2072_v7  ;;  %s395_s13 = scalar_select %p394_p11, %s2196_s17, 1  ;;  %v812_v21 = vld [vmem:[%s2310_s14] sm:$0xff]  ;;  %vm1482_vm4 = vcmask 261120  }
  0x8c   : > { %1722 = vmatpush3.msra.mxu0 %v403_v1  ;;  %1865 = vset.pattern.permute.xlu0 %v2074_v10  ;;  %s2076_s9 = smov 112   ;;  %s1684_s21 = sshll.u32 %s2196_s17, 7 }
  0x8d   : > { %1723 = vmatprep.subr.mxu0 %v402_v3  ;;  %s1660_s28 = sshll.u32 %s395_s13, 3  ;;  %s392_s1 = scalar_lea.vmem [#allocation10], %s1657_s19 }
  0x8e   : > { %1724 = vmatpush3.msra.mxu0 %v402_v3  ;;  %s397_s8 = scalar_lea.vmem %s2478_s3, %s1660_s28  ;;  %s1513_s12 = sshll.u32 %s392_s1, 4  ;;  %s1514_s12 = int_to_ptr.vmem [resolvable:$true] %s1513_s12 }
  0x8f   : > { %1726 = vmatmul.mubr.msk.f32.vlgmr.msra.gmra.mxu0 %vm405_vm0, %v399_v4  ;;  %1746 = vmatprep.subr.mxu0 %v2072_v7  ;;  %v814_v13 = vld [vmem:[%s397_s8] sm:$0xff]  ;;  %s2518_s7 = sld [smem:[#allocation23_spill]]  ;;  %s1500_s18 = scalar_lea.sflag [#allocation4], %s2298_s0 }
  0x90   : > { %1728 = vmatprep.mubr.msk.f32.mxu0 %vm405_vm0, %v400_v5  ;;  %s1992_s10 = scalar_lea.vmem %s1514_s12, 128  ;;  %p2519_p1 = scmp.ne.s32.totalorder %s2507_s16, 0 }
  0x91   : > { %p1993_p13 = scmp.ne.s32.totalorder %s1514_s12, %s1992_s10  ;;  %s2077_s15 = smov [#allocation10]  }
  0x92   : > { %s1996_s17 = sshll.u32 %s2077_s15, 4  ;;  %s1997_s17 = int_to_ptr.vmem [resolvable:$false] %s1996_s17 }
  0x93   : > { %1729 = vmatmul.mubr.msk.f32.gmra.mxu0 %vm405_vm0, %v401_v6  ;;  %p1994_p5 = pnand %p1993_p13, %p2519_p1  ;;  %s1998_s19 = scalar_lea.vmem %s1997_s17, 256 }
  0x94   : > { %1748 = vmatprep.mubr.msk.f32.mxu0 %vm2073_vm1, %v2072_v7  ;;  %p1999_p9 = scmp.lt.s32.totalorder %s1514_s12, %s1997_s17  ;;  %p2000_p3 = scmp.lt.s32.totalorder %s1998_s19, %s1992_s10 }
  0x95   : > { %s1511_s24 = scalar_lea.hbm %s2518_s7, %s1684_s21  ;;  %p1995_p10 = pneg %p1994_p5 }
  0x96   : > { %p2001_p4 = por %p2000_p3, %p1999_p9 }
  0x98   : > { %p2002_p12 = pnand %p2001_p4, %p1995_p10 }
 0x14f   : > { %v2340_v8 = vpop.f32.mrf.mxu0 }
 0x151   : > { %v2343_v9 = vpop.f32.mrf.mxu0 }
 0x152   : > { %504 = vrot.lane.b32.xlu0 %v2343_v9, %s2075_s30 }
 0x153   : > { %v2347_v11 = vpop.f32.mrf.mxu0 }
 0x155   : > { %v2349_v12 = vpop.f32.mrf.mxu0 }
 0x156   : > { %582 = vrot.lane.b32.xlu0 %v2340_v8, %s2075_s30  ;;  %659 = vrot.lane.b32.xlu1 %v2349_v12, %s2075_s30 }
 0x15a   : > { %736 = vrot.lane.b32.xlu1 %v2347_v11, %s2075_s30  ;;  %823 = vperm.xlu0 %1865, %v814_v13  }
 0x1c4   : > { %v505_v14 = vpop.permute.xlu0 %504 }
 0x1c5   : > { %1732 = vmatpush3.xpose.msk.msra.mxu1 %vm506_vm2, %v505_v14 }
 0x1c6   : > { %1736 = vmatprep.subr.mxu1 %v2072_v7 }
 0x1c8   : > { %1734 = vmatmul.mubr.msk.f32.vlgmr.msra.gmra.mxu1 %vm506_vm2, %v2343_v9  ;;  %v583_v15 = vpop.permute.xlu0 %582  ;;  %v660_v16 = vpop.permute.xlu1 %659 }
 0x1c9   : > { %1737 = vmatpush3.xpose.msk.msra.mxu1 %vm506_vm2, %v583_v15  ;;  %1738 = vmatprep.mubr.msk.f32.mxu1 %vm2073_vm1, %v2072_v7  ;;  %v1186_v15 = vld [vmem:[#allocation8] sm:$0xff] }
 0x1ca   : > { %1741 = vmatprep.subr.mxu1 %v2072_v7 }
 0x1cc   : > { %1739 = vmatmul.mubr.msk.f32.vlgmr.msra.gmra.mxu1 %vm506_vm2, %v2340_v8  ;;  %v737_v17 = vpop.permute.xlu1 %736 }
 0x1cd   : > { %1742 = vmatpush3.xpose.msk.msra.mxu1 %vm506_vm2, %v660_v16  ;;  %1747 = vmatpush3.xpose.msk.msra.mxu0 %vm506_vm2, %v737_v17  ;;  %v1187_v16 = vld [vmem:[#allocation8 + $0x8] sm:$0xff]  ;;  %v1188_v17 = vld [vmem:[#allocation8 + $0x10] sm:$0xff] }
 0x1ce   : > { %1743 = vmatprep.mubr.msk.f32.mxu1 %vm2073_vm1, %v2072_v7  ;;  %1751 = vmatprep.subr.mxu1 %v2072_v7 }
 0x1cf   : > { %1756 = vmatprep.subr.mxu0 %v2072_v7 }
 0x1d0   : > { %1744 = vmatmul.mubr.msk.f32.vlgmr.msra.gmra.mxu1 %vm506_vm2, %v2349_v12  ;;  %1749 = vmatmul.mubr.msk.f32.vlgmr.msra.gmra.mxu0 %vm506_vm2, %v2347_v11 }
 0x1d1   : > { %1753 = vmatprep.mubr.msk.f32.mxu1 %vm2073_vm1, %v2072_v7  ;;  %1758 = vmatprep.mubr.msk.f32.mxu0 %vm2073_vm1, %v2072_v7 }
 0x1d5   : > { %v824_v19 = vpop.permute.xlu0 %823 }
 0x1d6   : > { %v826_v20 = vmul.f32 %v1673_v18, %v824_v19 }
 0x1d8   : > { %vm827_vm3 = vcmp.eq.f32.partialorder %v826_v20, 0.0  ;;  %v1189_v20 = vld [vmem:[#allocation8 + $0x18] sm:$0xff] }
 0x288   : > { %v577_v22 = vpop.f32.mrf.mxu1 }
 0x289   : > { %v828_v23 = vmul.f32 %v812_v21, %v577_v22 }
 0x28a   : > { %v1735_v24 = vpop.f32.mrf.mxu1 }
 0x28b   : > { %v834_v25 = vsel %vm827_vm3, -1.767767e+19, %v828_v23 }
 0x28c   : > { %v654_v26 = vpop.f32.mrf.mxu1  ;;  %v838_v27 = vsel %vm506_vm2, %v834_v25, -inf }
 0x28d   : > { %v829_v28 = vmul.f32 %v812_v21, %v654_v26  ;;  %839 = vmax.xlane.f32.xlu1 %v838_v27 }
 0x28e   : > { %v1740_v29 = vpop.f32.mrf.mxu1 }
 0x28f   : > { %v835_v30 = vsel %vm827_vm3, -1.767767e+19, %v829_v28 }
 0x290   : > { %v731_v31 = vpop.f32.mrf.mxu1  ;;  %v808_v32 = vpop.f32.mrf.mxu0  ;;  %v841_v33 = vsel %vm506_vm2, %v835_v30, -inf }
 0x291   : > { %v830_v34 = vmul.f32 %v812_v21, %v731_v31  ;;  %v831_v35 = vmul.f32 %v812_v21, %v808_v32  ;;  %842 = vmax.xlane.f32.xlu0 %v841_v33 }
 0x292   : > { %v1745_v36 = vpop.f32.mrf.mxu1  ;;  %v1750_v37 = vpop.f32.mrf.mxu0 }
 0x293   : > { %v836_v38 = vsel %vm827_vm3, -1.767767e+19, %v830_v34  ;;  %v837_v39 = vsel %vm827_vm3, -1.767767e+19, %v831_v35 }
 0x294   : > { %v844_v40 = vsel %vm506_vm2, %v836_v38, -inf  ;;  %v847_v41 = vsel %vm506_vm2, %v837_v39, -inf }
 0x295   : > { %845 = vmax.xlane.f32.xlu1 %v844_v40  ;;  %848 = vmax.xlane.f32.xlu0 %v847_v41  ;;  %v1682_v40 = vld [vmem:[%s2481_s6] ss:$0 sm:$0xff] }
 0x2a6   : > { %882 = vrot.lane.b32.xlu1 %v2343_v9, %s2076_s9 }
 0x316   : > { %v840_v42 = vpop.xlane.xlu1 %839 }
 0x317   : > { %v850_v43 = vsub.f32 %v834_v25, %v840_v42 }
 0x319   : > { %v854_v44 = vmul.f32 1.442695, %v850_v43 }
 0x31a   : > { %v843_v45 = vpop.xlane.xlu0 %842 }
 0x31b   : > { %1866 = vpow2.f32 %v854_v44  ;;  %v851_v46 = vsub.f32 %v835_v30, %v843_v45 }
 0x31d   : > { %v856_v50 = vmul.f32 1.442695, %v851_v46 }
 0x31e   : > { %v849_v47 = vpop.xlane.xlu0 %848  ;;  %v846_v48 = vpop.xlane.xlu1 %845 }
 0x31f   : > { %v853_v49 = vsub.f32 %v837_v39, %v849_v47  ;;  %v852_v59 = vsub.f32 %v836_v38, %v846_v48 }
 0x321   : > { %v860_v51 = vmul.f32 1.442695, %v853_v49  ;;  %v858_v60 = vmul.f32 1.442695, %v852_v59 }
 0x322   : > { %v883_v52 = vpop.permute.xlu1 %882 }
 0x323   : > { %1868 = vpow2.f32 %v860_v51  ;;  %1752 = vmatpush3.msra.mxu1 %v883_v52 }
 0x324   : > { %1761 = vmatprep.subr.mxu1 %v2072_v7  ;;  %1870 = vpow2.f32 %v856_v50 }
 0x325   : > { %1872 = vpow2.f32 %v858_v60 }
 0x328   : > { %v1867_v53 = vpop.eup %1866 }
 0x329   : > { %v862_v54 = vsel %vm506_vm2, %v1867_v53, 0.0 }
 0x32a   : > { %863 = vadd.xlane.f32.xlu1 %v862_v54 }
 0x330   : > { %v1869_v55 = vpop.eup %1868 }
 0x331   : > { %v871_v56 = vsel %vm506_vm2, %v1869_v55, 0.0  ;;  %v1871_v57 = vpop.eup %1870 }
 0x332   : > { %872 = vadd.xlane.f32.xlu0 %v871_v56  ;;  %v865_v58 = vsel %vm506_vm2, %v1871_v57, 0.0  ;;  %v1873_v61 = vpop.eup %1872 }
 0x333   : > { %v868_v62 = vsel %vm506_vm2, %v1873_v61, 0.0 }
 0x336   : > { %866 = vadd.xlane.f32.xlu0 %v865_v58 }
 0x33b   : > { %1034 = vrot.lane.b32.xlu1 %v2349_v12, %s2076_s9 }
 0x34c   : > { %958 = vrot.lane.b32.xlu0 %v2340_v8, %s2076_s9 }
 0x35f   : > { %869 = vadd.xlane.f32.xlu1 %v868_v62 }
 0x370   : > { %1110 = vrot.lane.b32.xlu1 %v2347_v11, %s2076_s9 }
 0x3b3   : > { %v864_v63 = vpop.xlane.xlu1 %863 }
 0x3b4   : > { %1874 = vrcp.f32 %v864_v63 }
 0x3b7   : > { %v1035_v5 = vpop.permute.xlu1 %1034 }
 0x3bb   : > { %v873_v0 = vpop.xlane.xlu0 %872 }
 0x3bf   : > { %v867_v1 = vpop.xlane.xlu0 %866 }
 0x3c0   : > { %1876 = vrcp.f32 %v867_v1 }
 0x3c1   : > { %v1875_v2 = vpop.eup %1874  ;;  %1878 = vrcp.f32 %v873_v0 }
 0x3c2   : > { %v878_v3 = vmul.f32 %v1875_v2, %v1867_v53 }
 0x3c3   : > { %v959_v4 = vpop.permute.xlu0 %958 }
 0x3c4   : > { %1754 = vmatmul.mubr.msk.f32.vlgmr.msra.gmra.mxu1 %vm506_vm2, %v878_v3  ;;  %1757 = vmatpush3.msra.mxu0 %v959_v4 }
 0x3c5   : > { %1762 = vmatpush3.msra.mxu1 %v1035_v5  ;;  %1766 = vmatprep.subr.mxu0 %v2072_v7 }
 0x3c6   : > { %1763 = vmatprep.mubr.msk.f32.mxu1 %vm2073_vm1, %v2072_v7  ;;  %1771 = vmatprep.subr.mxu1 %v2072_v7 }
 0x3cd   : > { %v1877_v6 = vpop.eup %1876 }
 0x3ce   : > { %v879_v8 = vmul.f32 %v1877_v6, %v1871_v57  ;;  %v1879_v10 = vpop.eup %1878 }
 0x3cf   : > { %v881_v12 = vmul.f32 %v1879_v10, %v1869_v55 }
 0x3d0   : > { %1759 = vmatmul.mubr.msk.f32.vlgmr.msra.gmra.mxu0 %vm506_vm2, %v879_v8 }
 0x3d1   : > { %1768 = vmatprep.mubr.msk.f32.mxu0 %vm2073_vm1, %v2072_v7 }
 0x3e8   : > { %v870_v9 = vpop.xlane.xlu1 %869 }
 0x3e9   : > { %1880 = vrcp.f32 %v870_v9 }
 0x3ec   : > { %v1111_v11 = vpop.permute.xlu1 %1110 }
 0x3ed   : > { %1767 = vmatpush3.msra.mxu0 %v1111_v11 }
 0x3ee   : > { %1769 = vmatmul.mubr.msk.f32.vlgmr.msra.gmra.mxu0 %vm506_vm2, %v881_v12  ;;  %1776 = vmatprep.subr.mxu0 %v2072_v7 }
 0x3ef   : > { %1778 = vmatprep.mubr.msk.f32.mxu0 %vm2073_vm1, %v2072_v7  ;;  %1777 = vmatpush3.msra.mxu0 %v1187_v16 }
 0x3f0   : > { %1786 = vmatprep.subr.mxu0 %v2072_v7 }
 0x3f6   : > { %v1881_v13 = vpop.eup %1880 }
 0x3f7   : > { %v880_v14 = vmul.f32 %v1881_v13, %v1873_v61 }
 0x3f9   : > { %1764 = vmatmul.mubr.msk.f32.vlgmr.msra.gmra.mxu1 %vm506_vm2, %v880_v14 }
 0x3fa   : > { %1773 = vmatprep.mubr.msk.f32.mxu1 %vm2073_vm1, %v2072_v7  ;;  %1772 = vmatpush3.msra.mxu1 %v1186_v15 }
 0x3fb   : > { %1781 = vmatprep.subr.mxu1 %v2072_v7 }
 0x484   : > { %v954_v18 = vpop.f32.mrf.mxu1 }
 0x485   : > { %1774 = vmatmul.mubr.msk.f32.vlgmr.msra.gmra.mxu1 %vm506_vm2, %v954_v18 }
 0x486   : > { %v1755_v19 = vpop.f32.mrf.mxu1  ;;  %1782 = vmatpush3.msra.mxu1 %v1188_v17  ;;  %1783 = vmatprep.mubr.msk.f32.mxu1 %vm2073_vm1, %v2072_v7 }
 0x490   : > { %v1030_v21 = vpop.f32.mrf.mxu0 }
 0x491   : > { %1779 = vmatmul.mubr.msk.f32.vlgmr.msra.gmra.mxu0 %vm506_vm2, %v1030_v21 }
 0x492   : > { %v1760_v22 = vpop.f32.mrf.mxu0  ;;  %1787 = vmatpush3.msra.mxu0 %v1189_v20  ;;  %1788 = vmatprep.mubr.msk.f32.mxu0 %vm2073_vm1, %v2072_v7 }
 0x4ae   : > { %v1182_v23 = vpop.f32.mrf.mxu0 }
 0x4af   : > { %1789 = vmatmul.mubr.msk.f32.vlgmr.msra.gmra.mxu0 %vm506_vm2, %v1182_v23 }
 0x4b0   : > { %v1770_v24 = vpop.f32.mrf.mxu0 }
 0x4b9   : > { %v1106_v25 = vpop.f32.mrf.mxu1 }
 0x4ba   : > { %1784 = vmatmul.mubr.msk.f32.vlgmr.msra.gmra.mxu1 %vm506_vm2, %v1106_v25 }
 0x4bb   : > { %v1765_v26 = vpop.f32.mrf.mxu1 }
 0x545   : > { %v1259_v27 = vpop.f32.mrf.mxu1 }
 0x546   : > { %v1483_v7 = vsel %vm1482_vm4, %v1259_v27, 0.0 }
 0x547   : > { %v1775_v28 = vpop.f32.mrf.mxu1 }
 0x551   : > { %v1332_v29 = vpop.f32.mrf.mxu0 }
 0x552   : > { %v1484_v33 = vsel %vm1482_vm4, %v1332_v29, 0.0 }
 0x553   : > { %v1780_v30 = vpop.f32.mrf.mxu0  ;;  %v1485_v34 = vadd.f32 %v1484_v33, %v1483_v7 }
 0x56f   : > { %v1478_v31 = vpop.f32.mrf.mxu0 }
 0x570   : > { %v1488_v39 = vsel %vm1482_vm4, %v1478_v31, 0.0 }
 0x571   : > { %v1790_v32 = vpop.f32.mrf.mxu0 }
 0x57a   : > { %v1405_v35 = vpop.f32.mrf.mxu1 }
 0x57b   : > { %v1486_v36 = vsel %vm1482_vm4, %v1405_v35, 0.0 }
 0x57c   : > { %v1487_v37 = vadd.f32 %v1486_v36, %v1485_v34  ;;  %v1785_v38 = vpop.f32.mrf.mxu1 }
 0x57e   : > { %v1489_v41 = vadd.f32 %v1488_v39, %v1487_v37 }
 0x580   : > { %v1497_v42 = vadd.f32 %v1682_v40, %v1489_v41 }
 0x582   : > { %1498 = vst.msk [vmem:[%s392_s1] sm:$0xff] %vm1482_vm4, %v1497_v42 }
 0x583   : > { %2005 = shalt.err (!%p2002_p12)
}
 0x584   : > { %s2006_s22 = scalar_lea.hbm %s1511_s24, 128  ;;  %s2010_s30 = scalar_lea.hbm %s2518_s7, 256 }
 0x585   : > { %p2007_p2 = scmp.ne.s32.totalorder %s1511_s24, %s2006_s22  ;;  %p2011_p6 = scmp.lt.s32.totalorder %s1511_s24, %s2518_s7 }
 0x586   : > { %p2012_p0 = scmp.lt.s32.totalorder %s2010_s30, %s2006_s22 }
 0x587   : > { %p2008_p7 = pnand %p2007_p2, %p2519_p1 }
 0x588   : > { %p2013_p11 = por %p2012_p0, %p2011_p6 }
 0x589   : > { %p2009_p8 = pneg %p2008_p7 }
 0x58b   : > { %p2014_p13 = pnand %p2013_p11, %p2009_p8 }
 0x58d   : > { %2017 = shalt.err (!%p2014_p13)
}
 0x58e   : > { %1801 = dma.vmem_to_hbm [thread:$0]  (%p2519_p1), %s1514_s12, 128, %s1511_s24, %s1500_s18  }
 0x58f PF: > { %s2520_s11 = sld [smem:[#allocation15_spill]]  ;;  %p2523_p10 = scmp.ge.s32.totalorder %s2064_s27, 2 }
 0x590   : > { %s2521_s26 = sld [smem:[#allocation19_spill]] }
 0x595   : > { %s1525_s8 = sand.u32 1, %s2520_s11  }
 0x596   : > { %p2522_p5 = scmp.ne.s32.totalorder %s2521_s26, 0  ;;  %s1526_s9 = scalar_lea.sflag [#allocation4], %s1525_s8 }
 0x598   : > { %p1818_p9 = pnand %p2523_p10, %p2522_p5 }
 0x59a   : > { %p1819_p3 = pneg %p1818_p9 }
 0x59c   : > { %2047 = dma.done.wait (%p1819_p3), %s1526_s9, 128  }
 0x59d   : > { %2049 = vsyncadd (%p1819_p3), %s1526_s9, 4294967168  ;;  %s2524_s27 = sld [smem:[#allocation17_spill]]  ;;  %s2527_s24 = smov %s2056_s25 }
 0x59e   : > { %s2525_s20 = sld [smem:[#allocation16_spill]] }
 0x59f   : > { %s2526_s26 = sld [smem:[#allocation18_spill]] }
 0x5a3   : > { %p24_p4 = scmp.ge.s32.totalorder %s2524_s27, 4  }
 0x5a4   : > { %s2528_s25 = smov %s2525_s20 }
 0x5a5   :  { %26 = sbr.rel (!%p24_p4) target bundleno = 13 (0xd), region = 124 }
 0x5aa   :  { %1531 = vsyncpa [#allocation3], 1 }
 0x5ab   :  { %1533 = vsyncpa [#allocation3 + $0x1], 1 }
 0x5ac   :  { %1534 = vsyncpa [#allocation6], 1 }
 0x5ad   :  { %1536 = vsyncpa [#allocation6 + $0x1], 1 }
 0x5ae   :  { %1537 = vsyncpa [#allocation9], 1 }
 0x5af   :  { %1538 = vsyncpa [#allocation4], 1 }
 0x5b0   :  { %1540 = vsyncpa [#allocation4 + $0x1], 1 }

</bundles_post_ra>
